<compile_context>
chip_gen: v5e
topology: v5e:2x2
jax: 0.10.0
libtpu: 0.0.40
codegen_flags: <defaults>
</compile_context>

<pallas_src>
import jax
import jax.numpy as jnp
import numpy as np
from jax.experimental import pallas as pl
from jax.experimental.pallas import tpu as pltpu

INPUT_DIM   = 8                       # 7 raw trajectory channels + 1 time channel
EMBED_DIM   = 64
NUM_HEADS   = 4
HEAD_DIM    = EMBED_DIM // NUM_HEADS  # 16
FFN_HIDDEN  = 128
OUTPUT_DIM  = 768
LORA_R      = 16
LORA_ALPHA  = 1.0
LORA_SCALE  = LORA_ALPHA / LORA_R
SAMPLE_RATE = 2

PARAM_ORDER = ["we", "be",
               "wq", "aq", "bq",
               "wk", "ak", "bk",
               "wv", "av", "bv",
               "wo", "bo",
               "w1", "b1",
               "w2", "b2"]


def _guidance_kernel(p_ref, pt_ref,
                     wq_ref, bq_ref,
                     wk_ref, bk_ref,
                     wv_ref, bv_ref,
                     wo1_ref, b01_ref,
                     w2_ref, b2_ref,
                     out_ref):
    f32 = jnp.float32
    tb, n, _ = p_ref.shape
    _, m, _ = pt_ref.shape

    # Flatten TB trajectories into one token axis for the dense projections.
    P  = p_ref[...].reshape(tb * n, INPUT_DIM)    # keys/values tokens [TB*N, 8]
    Pt = pt_ref[...].reshape(tb * m, INPUT_DIM)   # query tokens       [TB*M, 8]

    # ---- embedding + LoRA folded into the projections (exact algebra) ----
    q = jnp.dot(Pt, wq_ref[...], preferred_element_type=f32) + bq_ref[...]   # [TB*M, 64]
    k = jnp.dot(P,  wk_ref[...], preferred_element_type=f32) + bk_ref[...]   # [TB*N, 64]
    v = jnp.dot(P,  wv_ref[...], preferred_element_type=f32) + bv_ref[...]   # [TB*N, 64]

    q3 = q.reshape(tb, m, EMBED_DIM)
    k3 = k.reshape(tb, n, EMBED_DIM)
    v3 = v.reshape(tb, n, EMBED_DIM)

    # ---- multi-head attention, batched over the TB trajectories ----
    inv_sqrt_d = 1.0 / float(np.sqrt(HEAD_DIM))
    inv_m = 1.0 / float(m)
    pooled_heads = []
    for h in range(NUM_HEADS):                    # static, 4 heads
        lo, hi = h * HEAD_DIM, (h + 1) * HEAD_DIM
        qh = q3[:, :, lo:hi]                      # [TB, M, 16]
        kh = k3[:, :, lo:hi]                      # [TB, N, 16]
        vh = v3[:, :, lo:hi]                      # [TB, N, 16]
        s = jnp.einsum('bmd,bnd->bmn', qh, kh,
                       preferred_element_type=f32) * inv_sqrt_d        # [TB, M, N]
        s = s - jnp.max(s, axis=-1, keepdims=True)
        e = jnp.exp(s)
        acc = jnp.einsum('bmn,bnd->bmd', e, vh,
                         preferred_element_type=f32)                   # [TB, M, 16]
        denom = jnp.sum(e, axis=-1, keepdims=True)                     # [TB, M, 1]
        # deferred softmax normalization on the small head output; exact recip
        # keeps the 2e-4 tolerance (approx=True would need a NR step).
        head = acc * pl.reciprocal(denom, approx=False)                # [TB, M, 16]
        # mean-pool over the query tokens BEFORE out_proj (pool commutes with
        # the linear); per-head pooled output is tiny: [TB, 16].
        pooled_heads.append(jnp.sum(head, axis=1) * inv_m)
    pooled = jnp.concatenate(pooled_heads, axis=-1)                    # [TB, 64]

    # ---- out_proj folded into ffn[0]: relu(pooled @ (wo@w1) + (bo@w1+b1)) ----
    h1 = jnp.maximum(
        jnp.dot(pooled, wo1_ref[...], preferred_element_type=f32) + b01_ref[...],
        0.0)                                                           # [TB, 128]
    out = jnp.dot(h1, w2_ref[...], preferred_element_type=f32) + b2_ref[...]  # [TB, 768]
    out_ref[...] = out[None]


def _choose_tb(B):
    """Largest power-of-two TB <= 8 such that the parallel grid axis has >= 2
    steps whenever B >= 2 (keeps both v7x TensorCores busy, limits padding)."""
    if B <= 1:
        return 1
    half = (B + 1) // 2
    tb = 1
    while tb * 2 <= min(8, half):
        tb *= 2
    return tb


def init_params(key):
    # Synthetic deterministic init (shapes follow the module's __init__).
    # NOTE: PyTorch zero-inits lora_B; we use small random values instead so the
    # LoRA path is actually exercised numerically.
    shapes = {
        "we": (INPUT_DIM, EMBED_DIM),  "be": (1, EMBED_DIM),
        "wq": (EMBED_DIM, EMBED_DIM),  "aq": (EMBED_DIM, LORA_R), "bq": (LORA_R, EMBED_DIM),
        "wk": (EMBED_DIM, EMBED_DIM),  "ak": (EMBED_DIM, LORA_R), "bk": (LORA_R, EMBED_DIM),
        "wv": (EMBED_DIM, EMBED_DIM),  "av": (EMBED_DIM, LORA_R), "bv": (LORA_R, EMBED_DIM),
        "wo": (EMBED_DIM, EMBED_DIM),  "bo": (1, EMBED_DIM),
        "w1": (EMBED_DIM, FFN_HIDDEN), "b1": (1, FFN_HIDDEN),
        "w2": (FFN_HIDDEN, OUTPUT_DIM), "b2": (1, OUTPUT_DIM),
    }
    params = {}
    for i, name in enumerate(PARAM_ORDER):
        k = jax.random.fold_in(key, i)
        params[name] = 0.1 * jax.random.normal(k, shapes[name], jnp.float32)
    return params


def trajectory_guidance_forward(T, params, sample_key):
    """Forward of TrajectoryGuidanceModel. T: [B, N, 7] (or [N, 7])."""
    if T.ndim == 2:
        T = T[None]
    T = T.astype(jnp.float32)
    B, N, _ = T.shape

    # add_time: concat a linspace(0,1,N) time channel
    time = jnp.broadcast_to(jnp.linspace(0.0, 1.0, N)[None, :, None], (B, N, 1))
    P = jnp.concatenate([T, time], axis=-1)                    # [B, N, 8]

    M = N // SAMPLE_RATE
    # TODO(synk): torch uses np.random.choice (nondeterministic global RNG);
    # here we use a deterministic per-trajectory permutation (same semantics:
    # M rows sampled without replacement), vmapped over the batch.
    keys = jax.random.split(sample_key, B)
    idx = jax.vmap(lambda k: jax.random.permutation(k, N)[:M])(keys)   # [B, M]
    Pt = jnp.take_along_axis(P, idx[:, :, None], axis=1)               # [B, M, 8]

    # ---- algebraic weight folding (exact), done once outside the kernel ----
    hi = jax.lax.Precision.HIGHEST
    wq_eff = params["wq"] + LORA_SCALE * jnp.dot(params["aq"], params["bq"], precision=hi)
    wk_eff = params["wk"] + LORA_SCALE * jnp.dot(params["ak"], params["bk"], precision=hi)
    wv_eff = params["wv"] + LORA_SCALE * jnp.dot(params["av"], params["bv"], precision=hi)
    # embedding Linear(8,64) folded into the bias-less q/k/v projections
    wq_f = jnp.dot(params["we"], wq_eff, precision=hi)
    bq_f = jnp.dot(params["be"], wq_eff, precision=hi)
    wk_f = jnp.dot(params["we"], wk_eff, precision=hi)
    bk_f = jnp.dot(params["be"], wk_eff, precision=hi)
    wv_f = jnp.dot(params["we"], wv_eff, precision=hi)
    bv_f = jnp.dot(params["be"], wv_eff, precision=hi)
    # mean-pool commutes with out_proj and ffn[0]: fold wo into w1
    wo1 = jnp.dot(params["wo"], params["w1"], precision=hi)            # [64, 128]
    b01 = jnp.dot(params["bo"], params["w1"], precision=hi) + params["b1"]  # [1, 128]

    weights = [wq_f, bq_f, wk_f, bk_f, wv_f, bv_f, wo1, b01,
               params["w2"], params["b2"]]

    # ---- adaptive TB: >=2 grid steps when B>=2, minimal padding ----
    TB = _choose_tb(B)
    G = pl.cdiv(B, TB)
    B_pad = G * TB
    if B_pad != B:
        pad = B_pad - B
        P_in  = jnp.concatenate([P,  jnp.zeros((pad, N, INPUT_DIM), jnp.float32)], axis=0)
        Pt_in = jnp.concatenate([Pt, jnp.zeros((pad, M, INPUT_DIM), jnp.float32)], axis=0)
    else:
        P_in, Pt_in = P, Pt

    # Weights use constant-index full-array blocks.
    def full_spec(arr):
        nd = arr.ndim
        return pl.BlockSpec(arr.shape, lambda g, _nd=nd: (0,) * _nd)

    in_specs = [
        pl.BlockSpec((TB, N, INPUT_DIM), lambda g: (g, 0, 0)),   # P       (TB trajectories / step)
        pl.BlockSpec((TB, M, INPUT_DIM), lambda g: (g, 0, 0)),   # P_tilde
    ] + [full_spec(w) for w in weights]

    out = pl.pallas_call(
        _guidance_kernel,
        # [G, TB, 768] so the block's last two dims equal full dims for any TB
        out_shape=jax.ShapeDtypeStruct((G, TB, OUTPUT_DIM), jnp.float32),
        grid_spec=pltpu.PrefetchScalarGridSpec(
            num_scalar_prefetch=0,
            grid=(G,),
            in_specs=in_specs,
            out_specs=pl.BlockSpec((1, TB, OUTPUT_DIM), lambda g: (g, 0, 0)),
        ),
        compiler_params=pltpu.CompilerParams(
            dimension_semantics=("parallel",),       # independent batch axis -> both v7x TCs
            vmem_limit_bytes=48 * 1024 * 1024),      # headroom above v5e's 16 MiB default
    )(P_in, Pt_in, *weights)

    out = out.reshape(B_pad, OUTPUT_DIM)[:B]
    return out, P, Pt


def reference_forward(P, Pt, params):
    """Pure-JAX reference with the original (unfolded) math."""
    def one(p, pt):
        pe = p @ params["we"] + params["be"]
        pte = pt @ params["we"] + params["be"]

        def lora(x, w, a, b):
            return x @ w + LORA_SCALE * ((x @ a) @ b)

        q = lora(pte, params["wq"], params["aq"], params["bq"])
        k = lora(pe,  params["wk"], params["ak"], params["bk"])
        v = lora(pe,  params["wv"], params["av"], params["bv"])
        m, n = q.shape[0], k.shape[0]
        qh = q.reshape(m, NUM_HEADS, HEAD_DIM).transpose(1, 0, 2)
        kh = k.reshape(n, NUM_HEADS, HEAD_DIM).transpose(1, 0, 2)
        vh = v.reshape(n, NUM_HEADS, HEAD_DIM).transpose(1, 0, 2)
        s = jnp.einsum("hmd,hnd->hmn", qh, kh) / np.sqrt(HEAD_DIM)
        w = jax.nn.softmax(s, axis=-1)
        ao = jnp.einsum("hmn,hnd->hmd", w, vh).transpose(1, 0, 2).reshape(m, EMBED_DIM)
        o = ao @ params["wo"] + params["bo"]
        pooled = o.mean(axis=0, keepdims=True)
        h1 = jax.nn.relu(pooled @ params["w1"] + params["b1"])
        return (h1 @ params["w2"] + params["b2"])[0]

    return jnp.stack([one(P[i], Pt[i]) for i in range(P.shape[0])])


if __name__ == "__main__":
    key = jax.random.PRNGKey(0)
    pkey, dkey, skey = jax.random.split(key, 3)

    params = init_params(pkey)

    B, N = 2, 16
    # raw trajectory: 7 channels (time channel is appended inside the forward)
    T = jax.random.normal(dkey, (B, N, INPUT_DIM - 1), jnp.float32)

    out, P, Pt = trajectory_guidance_forward(T, params, skey)
    out = jax.block_until_ready(out)
    assert out.shape == (B, OUTPUT_DIM)

    ref = reference_forward(P, Pt, params)
    np.testing.assert_allclose(np.asarray(out), np.asarray(ref), rtol=2e-4, atol=2e-4)

    print("KERNEL_OK")
</pallas_src>

<mosaic_0001>
module attributes {stable_mosaic.version = 11 : i64} {
  func.func @_guidance_kernel(%arg0: i32, %arg1: memref<1x16x8xf32, #tpu.memory_space<vmem>>, %arg2: memref<1x8x8xf32, #tpu.memory_space<vmem>>, %arg3: memref<8x64xf32, #tpu.memory_space<vmem>>, %arg4: memref<1x64xf32, #tpu.memory_space<vmem>>, %arg5: memref<8x64xf32, #tpu.memory_space<vmem>>, %arg6: memref<1x64xf32, #tpu.memory_space<vmem>>, %arg7: memref<8x64xf32, #tpu.memory_space<vmem>>, %arg8: memref<1x64xf32, #tpu.memory_space<vmem>>, %arg9: memref<64x128xf32, #tpu.memory_space<vmem>>, %arg10: memref<1x128xf32, #tpu.memory_space<vmem>>, %arg11: memref<128x768xf32, #tpu.memory_space<vmem>>, %arg12: memref<1x768xf32, #tpu.memory_space<vmem>>, %arg13: memref<1x1x768xf32, #tpu.memory_space<vmem>>) attributes {dimension_semantics = [#tpu.dimension_semantics<parallel>], iteration_bounds = array<i64: 2>, scalar_prefetch = 0 : i64, scratch_operands = 0 : i64, tpu.core_type = #tpu.core_type<tc>, window_params = [{transform_indices = @transform_0, window_bounds = array<i64: 1, 16, 8>}, {transform_indices = @transform_1, window_bounds = array<i64: 1, 8, 8>}, {pipeline_mode = #tpu.pipeline_mode<synchronous>, transform_indices = @transform_2, window_bounds = array<i64: 8, 64>}, {pipeline_mode = #tpu.pipeline_mode<synchronous>, transform_indices = @transform_3, window_bounds = array<i64: 1, 64>}, {pipeline_mode = #tpu.pipeline_mode<synchronous>, transform_indices = @transform_4, window_bounds = array<i64: 8, 64>}, {pipeline_mode = #tpu.pipeline_mode<synchronous>, transform_indices = @transform_5, window_bounds = array<i64: 1, 64>}, {pipeline_mode = #tpu.pipeline_mode<synchronous>, transform_indices = @transform_6, window_bounds = array<i64: 8, 64>}, {pipeline_mode = #tpu.pipeline_mode<synchronous>, transform_indices = @transform_7, window_bounds = array<i64: 1, 64>}, {pipeline_mode = #tpu.pipeline_mode<synchronous>, transform_indices = @transform_8, window_bounds = array<i64: 64, 128>}, {pipeline_mode = #tpu.pipeline_mode<synchronous>, transform_indices = @transform_9, window_bounds = array<i64: 1, 128>}, {pipeline_mode = #tpu.pipeline_mode<synchronous>, transform_indices = @transform_10, window_bounds = array<i64: 128, 768>}, {pipeline_mode = #tpu.pipeline_mode<synchronous>, transform_indices = @transform_11, window_bounds = array<i64: 1, 768>}, {transform_indices = @transform_12, window_bounds = array<i64: 1, 1, 768>}]} {
    %c0 = arith.constant 0 : index
    %c0_0 = arith.constant 0 : index
    %c0_1 = arith.constant 0 : index
    %0 = vector.load %arg1[%c0, %c0_0, %c0_1] : memref<1x16x8xf32, #tpu.memory_space<vmem>>, vector<1x16x8xf32>
    %1 = vector.shape_cast %0 : vector<1x16x8xf32> to vector<16x8xf32>
    %c0_2 = arith.constant 0 : index
    %c0_3 = arith.constant 0 : index
    %c0_4 = arith.constant 0 : index
    %2 = vector.load %arg2[%c0_2, %c0_3, %c0_4] : memref<1x8x8xf32, #tpu.memory_space<vmem>>, vector<1x8x8xf32>
    %3 = vector.shape_cast %2 : vector<1x8x8xf32> to vector<8x8xf32>
    %c0_5 = arith.constant 0 : index
    %c0_6 = arith.constant 0 : index
    %4 = vector.load %arg3[%c0_5, %c0_6] : memref<8x64xf32, #tpu.memory_space<vmem>>, vector<8x64xf32>
    %cst = arith.constant dense<0.000000e+00> : vector<8x64xf32>
    %5 = tpu.matmul %3, %4, %cst {dimension_numbers = #tpu.dot_dimension_numbers<[1], [0], [0], [1], [0, 0, 1, 1], [], []>} : vector<8x8xf32>, vector<8x64xf32>, vector<8x64xf32> -> vector<8x64xf32>
    %c0_7 = arith.constant 0 : index
    %c0_8 = arith.constant 0 : index
    %6 = vector.load %arg4[%c0_7, %c0_8] : memref<1x64xf32, #tpu.memory_space<vmem>>, vector<1x64xf32>
    %7 = vector.broadcast %6 : vector<1x64xf32> to vector<8x64xf32>
    %8 = arith.addf %5, %7 : vector<8x64xf32>
    %c0_9 = arith.constant 0 : index
    %c0_10 = arith.constant 0 : index
    %9 = vector.load %arg5[%c0_9, %c0_10] : memref<8x64xf32, #tpu.memory_space<vmem>>, vector<8x64xf32>
    %cst_11 = arith.constant dense<0.000000e+00> : vector<16x64xf32>
    %10 = tpu.matmul %1, %9, %cst_11 {dimension_numbers = #tpu.dot_dimension_numbers<[1], [0], [0], [1], [0, 0, 1, 1], [], []>} : vector<16x8xf32>, vector<8x64xf32>, vector<16x64xf32> -> vector<16x64xf32>
    %c0_12 = arith.constant 0 : index
    %c0_13 = arith.constant 0 : index
    %11 = vector.load %arg6[%c0_12, %c0_13] : memref<1x64xf32, #tpu.memory_space<vmem>>, vector<1x64xf32>
    %12 = vector.broadcast %11 : vector<1x64xf32> to vector<16x64xf32>
    %13 = arith.addf %10, %12 : vector<16x64xf32>
    %c0_14 = arith.constant 0 : index
    %c0_15 = arith.constant 0 : index
    %14 = vector.load %arg7[%c0_14, %c0_15] : memref<8x64xf32, #tpu.memory_space<vmem>>, vector<8x64xf32>
    %cst_16 = arith.constant dense<0.000000e+00> : vector<16x64xf32>
    %15 = tpu.matmul %1, %14, %cst_16 {dimension_numbers = #tpu.dot_dimension_numbers<[1], [0], [0], [1], [0, 0, 1, 1], [], []>} : vector<16x8xf32>, vector<8x64xf32>, vector<16x64xf32> -> vector<16x64xf32>
    %c0_17 = arith.constant 0 : index
    %c0_18 = arith.constant 0 : index
    %16 = vector.load %arg8[%c0_17, %c0_18] : memref<1x64xf32, #tpu.memory_space<vmem>>, vector<1x64xf32>
    %17 = vector.broadcast %16 : vector<1x64xf32> to vector<16x64xf32>
    %18 = arith.addf %15, %17 : vector<16x64xf32>
    %19 = vector.shape_cast %8 : vector<8x64xf32> to vector<1x8x64xf32>
    %20 = vector.shape_cast %13 : vector<16x64xf32> to vector<1x16x64xf32>
    %21 = vector.shape_cast %18 : vector<16x64xf32> to vector<1x16x64xf32>
    %22 = vector.extract_strided_slice %19 {offsets = [0, 0, 0], sizes = [1, 8, 16], strides = [1, 1, 1]} : vector<1x8x64xf32> to vector<1x8x16xf32>
    %23 = vector.extract_strided_slice %20 {offsets = [0, 0, 0], sizes = [1, 16, 16], strides = [1, 1, 1]} : vector<1x16x64xf32> to vector<1x16x16xf32>
    %24 = vector.extract_strided_slice %21 {offsets = [0, 0, 0], sizes = [1, 16, 16], strides = [1, 1, 1]} : vector<1x16x64xf32> to vector<1x16x16xf32>
    "tpu.trace_start"() <{level = 10 : i32, message = "bmd,bnd->bmn"}> : () -> ()
    %cst_19 = arith.constant dense<0.000000e+00> : vector<1x8x16xf32>
    %25 = tpu.matmul %22, %23, %cst_19 {dimension_numbers = #tpu.dot_dimension_numbers<[2], [2], [1], [1], [0, 0, 0, 1, 1, 1], [0], [0]>} : vector<1x8x16xf32>, vector<1x16x16xf32>, vector<1x8x16xf32> -> vector<1x8x16xf32>
    "tpu.trace_stop"() : () -> ()
    %cst_20 = arith.constant 2.500000e-01 : f32
    %26 = vector.broadcast %cst_20 : f32 to vector<1x8x16xf32>
    %27 = arith.mulf %25, %26 : vector<1x8x16xf32>
    %cst_21 = arith.constant dense<0xFF800000> : vector<1x8xf32>
    %28 = vector.multi_reduction <maximumf>, %27, %cst_21 [2] : vector<1x8x16xf32> to vector<1x8xf32>
    %29 = vector.shape_cast %28 : vector<1x8xf32> to vector<1x8x1xf32>
    %30 = vector.broadcast %29 : vector<1x8x1xf32> to vector<1x8x16xf32>
    %31 = arith.subf %27, %30 : vector<1x8x16xf32>
    %32 = math.exp %31 : vector<1x8x16xf32>
    "tpu.trace_start"() <{level = 10 : i32, message = "bmn,bnd->bmd"}> : () -> ()
    %cst_22 = arith.constant dense<0.000000e+00> : vector<1x8x16xf32>
    %33 = tpu.matmul %32, %24, %cst_22 {dimension_numbers = #tpu.dot_dimension_numbers<[2], [1], [1], [2], [0, 0, 0, 1, 1, 2], [0], [0]>} : vector<1x8x16xf32>, vector<1x16x16xf32>, vector<1x8x16xf32> -> vector<1x8x16xf32>
    "tpu.trace_stop"() : () -> ()
    %cst_23 = arith.constant dense<0.000000e+00> : vector<1x8xf32>
    %34 = vector.multi_reduction <add>, %32, %cst_23 [2] : vector<1x8x16xf32> to vector<1x8xf32>
    %35 = vector.shape_cast %34 : vector<1x8xf32> to vector<1x8x1xf32>
    %36 = tpu.reciprocal %35 : vector<1x8x1xf32> -> vector<1x8x1xf32>
    %37 = vector.broadcast %36 : vector<1x8x1xf32> to vector<1x8x16xf32>
    %38 = arith.mulf %33, %37 : vector<1x8x16xf32>
    %cst_24 = arith.constant dense<0.000000e+00> : vector<1x16xf32>
    %39 = vector.multi_reduction <add>, %38, %cst_24 [1] : vector<1x8x16xf32> to vector<1x16xf32>
    %cst_25 = arith.constant 1.250000e-01 : f32
    %40 = vector.broadcast %cst_25 : f32 to vector<1x16xf32>
    %41 = arith.mulf %39, %40 : vector<1x16xf32>
    %42 = vector.extract_strided_slice %19 {offsets = [0, 0, 16], sizes = [1, 8, 16], strides = [1, 1, 1]} : vector<1x8x64xf32> to vector<1x8x16xf32>
    %43 = vector.extract_strided_slice %20 {offsets = [0, 0, 16], sizes = [1, 16, 16], strides = [1, 1, 1]} : vector<1x16x64xf32> to vector<1x16x16xf32>
    %44 = vector.extract_strided_slice %21 {offsets = [0, 0, 16], sizes = [1, 16, 16], strides = [1, 1, 1]} : vector<1x16x64xf32> to vector<1x16x16xf32>
    "tpu.trace_start"() <{level = 10 : i32, message = "bmd,bnd->bmn"}> : () -> ()
    %cst_26 = arith.constant dense<0.000000e+00> : vector<1x8x16xf32>
    %45 = tpu.matmul %42, %43, %cst_26 {dimension_numbers = #tpu.dot_dimension_numbers<[2], [2], [1], [1], [0, 0, 0, 1, 1, 1], [0], [0]>} : vector<1x8x16xf32>, vector<1x16x16xf32>, vector<1x8x16xf32> -> vector<1x8x16xf32>
    "tpu.trace_stop"() : () -> ()
    %cst_27 = arith.constant 2.500000e-01 : f32
    %46 = vector.broadcast %cst_27 : f32 to vector<1x8x16xf32>
    %47 = arith.mulf %45, %46 : vector<1x8x16xf32>
    %cst_28 = arith.constant dense<0xFF800000> : vector<1x8xf32>
    %48 = vector.multi_reduction <maximumf>, %47, %cst_28 [2] : vector<1x8x16xf32> to vector<1x8xf32>
    %49 = vector.shape_cast %48 : vector<1x8xf32> to vector<1x8x1xf32>
    %50 = vector.broadcast %49 : vector<1x8x1xf32> to vector<1x8x16xf32>
    %51 = arith.subf %47, %50 : vector<1x8x16xf32>
    %52 = math.exp %51 : vector<1x8x16xf32>
    "tpu.trace_start"() <{level = 10 : i32, message = "bmn,bnd->bmd"}> : () -> ()
    %cst_29 = arith.constant dense<0.000000e+00> : vector<1x8x16xf32>
    %53 = tpu.matmul %52, %44, %cst_29 {dimension_numbers = #tpu.dot_dimension_numbers<[2], [1], [1], [2], [0, 0, 0, 1, 1, 2], [0], [0]>} : vector<1x8x16xf32>, vector<1x16x16xf32>, vector<1x8x16xf32> -> vector<1x8x16xf32>
    "tpu.trace_stop"() : () -> ()
    %cst_30 = arith.constant dense<0.000000e+00> : vector<1x8xf32>
    %54 = vector.multi_reduction <add>, %52, %cst_30 [2] : vector<1x8x16xf32> to vector<1x8xf32>
    %55 = vector.shape_cast %54 : vector<1x8xf32> to vector<1x8x1xf32>
    %56 = tpu.reciprocal %55 : vector<1x8x1xf32> -> vector<1x8x1xf32>
    %57 = vector.broadcast %56 : vector<1x8x1xf32> to vector<1x8x16xf32>
    %58 = arith.mulf %53, %57 : vector<1x8x16xf32>
    %cst_31 = arith.constant dense<0.000000e+00> : vector<1x16xf32>
    %59 = vector.multi_reduction <add>, %58, %cst_31 [1] : vector<1x8x16xf32> to vector<1x16xf32>
    %cst_32 = arith.constant 1.250000e-01 : f32
    %60 = vector.broadcast %cst_32 : f32 to vector<1x16xf32>
    %61 = arith.mulf %59, %60 : vector<1x16xf32>
    %62 = vector.extract_strided_slice %19 {offsets = [0, 0, 32], sizes = [1, 8, 16], strides = [1, 1, 1]} : vector<1x8x64xf32> to vector<1x8x16xf32>
    %63 = vector.extract_strided_slice %20 {offsets = [0, 0, 32], sizes = [1, 16, 16], strides = [1, 1, 1]} : vector<1x16x64xf32> to vector<1x16x16xf32>
    %64 = vector.extract_strided_slice %21 {offsets = [0, 0, 32], sizes = [1, 16, 16], strides = [1, 1, 1]} : vector<1x16x64xf32> to vector<1x16x16xf32>
    "tpu.trace_start"() <{level = 10 : i32, message = "bmd,bnd->bmn"}> : () -> ()
    %cst_33 = arith.constant dense<0.000000e+00> : vector<1x8x16xf32>
    %65 = tpu.matmul %62, %63, %cst_33 {dimension_numbers = #tpu.dot_dimension_numbers<[2], [2], [1], [1], [0, 0, 0, 1, 1, 1], [0], [0]>} : vector<1x8x16xf32>, vector<1x16x16xf32>, vector<1x8x16xf32> -> vector<1x8x16xf32>
    "tpu.trace_stop"() : () -> ()
    %cst_34 = arith.constant 2.500000e-01 : f32
    %66 = vector.broadcast %cst_34 : f32 to vector<1x8x16xf32>
    %67 = arith.mulf %65, %66 : vector<1x8x16xf32>
    %cst_35 = arith.constant dense<0xFF800000> : vector<1x8xf32>
    %68 = vector.multi_reduction <maximumf>, %67, %cst_35 [2] : vector<1x8x16xf32> to vector<1x8xf32>
    %69 = vector.shape_cast %68 : vector<1x8xf32> to vector<1x8x1xf32>
    %70 = vector.broadcast %69 : vector<1x8x1xf32> to vector<1x8x16xf32>
    %71 = arith.subf %67, %70 : vector<1x8x16xf32>
    %72 = math.exp %71 : vector<1x8x16xf32>
    "tpu.trace_start"() <{level = 10 : i32, message = "bmn,bnd->bmd"}> : () -> ()
    %cst_36 = arith.constant dense<0.000000e+00> : vector<1x8x16xf32>
    %73 = tpu.matmul %72, %64, %cst_36 {dimension_numbers = #tpu.dot_dimension_numbers<[2], [1], [1], [2], [0, 0, 0, 1, 1, 2], [0], [0]>} : vector<1x8x16xf32>, vector<1x16x16xf32>, vector<1x8x16xf32> -> vector<1x8x16xf32>
    "tpu.trace_stop"() : () -> ()
    %cst_37 = arith.constant dense<0.000000e+00> : vector<1x8xf32>
    %74 = vector.multi_reduction <add>, %72, %cst_37 [2] : vector<1x8x16xf32> to vector<1x8xf32>
    %75 = vector.shape_cast %74 : vector<1x8xf32> to vector<1x8x1xf32>
    %76 = tpu.reciprocal %75 : vector<1x8x1xf32> -> vector<1x8x1xf32>
    %77 = vector.broadcast %76 : vector<1x8x1xf32> to vector<1x8x16xf32>
    %78 = arith.mulf %73, %77 : vector<1x8x16xf32>
    %cst_38 = arith.constant dense<0.000000e+00> : vector<1x16xf32>
    %79 = vector.multi_reduction <add>, %78, %cst_38 [1] : vector<1x8x16xf32> to vector<1x16xf32>
    %cst_39 = arith.constant 1.250000e-01 : f32
    %80 = vector.broadcast %cst_39 : f32 to vector<1x16xf32>
    %81 = arith.mulf %79, %80 : vector<1x16xf32>
    %82 = vector.extract_strided_slice %19 {offsets = [0, 0, 48], sizes = [1, 8, 16], strides = [1, 1, 1]} : vector<1x8x64xf32> to vector<1x8x16xf32>
    %83 = vector.extract_strided_slice %20 {offsets = [0, 0, 48], sizes = [1, 16, 16], strides = [1, 1, 1]} : vector<1x16x64xf32> to vector<1x16x16xf32>
    %84 = vector.extract_strided_slice %21 {offsets = [0, 0, 48], sizes = [1, 16, 16], strides = [1, 1, 1]} : vector<1x16x64xf32> to vector<1x16x16xf32>
    "tpu.trace_start"() <{level = 10 : i32, message = "bmd,bnd->bmn"}> : () -> ()
    %cst_40 = arith.constant dense<0.000000e+00> : vector<1x8x16xf32>
    %85 = tpu.matmul %82, %83, %cst_40 {dimension_numbers = #tpu.dot_dimension_numbers<[2], [2], [1], [1], [0, 0, 0, 1, 1, 1], [0], [0]>} : vector<1x8x16xf32>, vector<1x16x16xf32>, vector<1x8x16xf32> -> vector<1x8x16xf32>
    "tpu.trace_stop"() : () -> ()
    %cst_41 = arith.constant 2.500000e-01 : f32
    %86 = vector.broadcast %cst_41 : f32 to vector<1x8x16xf32>
    %87 = arith.mulf %85, %86 : vector<1x8x16xf32>
    %cst_42 = arith.constant dense<0xFF800000> : vector<1x8xf32>
    %88 = vector.multi_reduction <maximumf>, %87, %cst_42 [2] : vector<1x8x16xf32> to vector<1x8xf32>
    %89 = vector.shape_cast %88 : vector<1x8xf32> to vector<1x8x1xf32>
    %90 = vector.broadcast %89 : vector<1x8x1xf32> to vector<1x8x16xf32>
    %91 = arith.subf %87, %90 : vector<1x8x16xf32>
    %92 = math.exp %91 : vector<1x8x16xf32>
    "tpu.trace_start"() <{level = 10 : i32, message = "bmn,bnd->bmd"}> : () -> ()
    %cst_43 = arith.constant dense<0.000000e+00> : vector<1x8x16xf32>
    %93 = tpu.matmul %92, %84, %cst_43 {dimension_numbers = #tpu.dot_dimension_numbers<[2], [1], [1], [2], [0, 0, 0, 1, 1, 2], [0], [0]>} : vector<1x8x16xf32>, vector<1x16x16xf32>, vector<1x8x16xf32> -> vector<1x8x16xf32>
    "tpu.trace_stop"() : () -> ()
    %cst_44 = arith.constant dense<0.000000e+00> : vector<1x8xf32>
    %94 = vector.multi_reduction <add>, %92, %cst_44 [2] : vector<1x8x16xf32> to vector<1x8xf32>
    %95 = vector.shape_cast %94 : vector<1x8xf32> to vector<1x8x1xf32>
    %96 = tpu.reciprocal %95 : vector<1x8x1xf32> -> vector<1x8x1xf32>
    %97 = vector.broadcast %96 : vector<1x8x1xf32> to vector<1x8x16xf32>
    %98 = arith.mulf %93, %97 : vector<1x8x16xf32>
    %cst_45 = arith.constant dense<0.000000e+00> : vector<1x16xf32>
    %99 = vector.multi_reduction <add>, %98, %cst_45 [1] : vector<1x8x16xf32> to vector<1x16xf32>
    %cst_46 = arith.constant 1.250000e-01 : f32
    %100 = vector.broadcast %cst_46 : f32 to vector<1x16xf32>
    %101 = arith.mulf %99, %100 : vector<1x16xf32>
    %102 = tpu.concatenate %41, %61, %81, %101 in 1 : vector<1x16xf32>, vector<1x16xf32>, vector<1x16xf32>, vector<1x16xf32> -> vector<1x64xf32>
    %c0_47 = arith.constant 0 : index
    %c0_48 = arith.constant 0 : index
    %103 = vector.load %arg9[%c0_47, %c0_48] : memref<64x128xf32, #tpu.memory_space<vmem>>, vector<64x128xf32>
    %cst_49 = arith.constant dense<0.000000e+00> : vector<1x128xf32>
    %104 = tpu.matmul %102, %103, %cst_49 {dimension_numbers = #tpu.dot_dimension_numbers<[1], [0], [0], [1], [0, 0, 1, 1], [], []>} : vector<1x64xf32>, vector<64x128xf32>, vector<1x128xf32> -> vector<1x128xf32>
    %c0_50 = arith.constant 0 : index
    %c0_51 = arith.constant 0 : index
    %105 = vector.load %arg10[%c0_50, %c0_51] : memref<1x128xf32, #tpu.memory_space<vmem>>, vector<1x128xf32>
    %106 = arith.addf %104, %105 : vector<1x128xf32>
    %cst_52 = arith.constant 0.000000e+00 : f32
    %107 = vector.broadcast %cst_52 : f32 to vector<1x128xf32>
    %108 = arith.maximumf %106, %107 : vector<1x128xf32>
    %c0_53 = arith.constant 0 : index
    %c0_54 = arith.constant 0 : index
    %109 = vector.load %arg11[%c0_53, %c0_54] : memref<128x768xf32, #tpu.memory_space<vmem>>, vector<128x768xf32>
    %cst_55 = arith.constant dense<0.000000e+00> : vector<1x768xf32>
    %110 = tpu.matmul %108, %109, %cst_55 {dimension_numbers = #tpu.dot_dimension_numbers<[1], [0], [0], [1], [0, 0, 1, 1], [], []>} : vector<1x128xf32>, vector<128x768xf32>, vector<1x768xf32> -> vector<1x768xf32>
    %c0_56 = arith.constant 0 : index
    %c0_57 = arith.constant 0 : index
    %111 = vector.load %arg12[%c0_56, %c0_57] : memref<1x768xf32, #tpu.memory_space<vmem>>, vector<1x768xf32>
    %112 = arith.addf %110, %111 : vector<1x768xf32>
    %113 = vector.shape_cast %112 : vector<1x768xf32> to vector<1x1x768xf32>
    %c0_58 = arith.constant 0 : index
    %c0_59 = arith.constant 0 : index
    %c0_60 = arith.constant 0 : index
    %114 = vector.load %arg13[%c0_58, %c0_59, %c0_60] : memref<1x1x768xf32, #tpu.memory_space<vmem>>, vector<1x1x768xf32>
    tpu.vector_store %arg13[%c0_58, %c0_59, %c0_60], %113 {strides = array<i32>} : memref<1x1x768xf32, #tpu.memory_space<vmem>>, vector<1x1x768xf32>,
    return
  }
  func.func @transform_0(%arg0: i32) -> (i32, i32, i32) {
    %c0_i32 = arith.constant 0 : i32
    %c0_i32_0 = arith.constant 0 : i32
    %c0_i32_1 = arith.constant 0 : i32
    return %arg0, %c0_i32, %c0_i32_0 : i32, i32, i32
  }
  func.func @transform_1(%arg0: i32) -> (i32, i32, i32) {
    %c0_i32 = arith.constant 0 : i32
    %c0_i32_0 = arith.constant 0 : i32
    %c0_i32_1 = arith.constant 0 : i32
    return %arg0, %c0_i32, %c0_i32_0 : i32, i32, i32
  }
  func.func @transform_2(%arg0: i32) -> (i32, i32) {
    %c0_i32 = arith.constant 0 : i32
    %c0_i32_0 = arith.constant 0 : i32
    %c0_i32_1 = arith.constant 0 : i32
    return %c0_i32, %c0_i32_0 : i32, i32
  }
  func.func @transform_3(%arg0: i32) -> (i32, i32) {
    %c0_i32 = arith.constant 0 : i32
    %c0_i32_0 = arith.constant 0 : i32
    %c0_i32_1 = arith.constant 0 : i32
    return %c0_i32, %c0_i32_0 : i32, i32
  }
  func.func @transform_4(%arg0: i32) -> (i32, i32) {
    %c0_i32 = arith.constant 0 : i32
    %c0_i32_0 = arith.constant 0 : i32
    %c0_i32_1 = arith.constant 0 : i32
    return %c0_i32, %c0_i32_0 : i32, i32
  }
  func.func @transform_5(%arg0: i32) -> (i32, i32) {
    %c0_i32 = arith.constant 0 : i32
    %c0_i32_0 = arith.constant 0 : i32
    %c0_i32_1 = arith.constant 0 : i32
    return %c0_i32, %c0_i32_0 : i32, i32
  }
  func.func @transform_6(%arg0: i32) -> (i32, i32) {
    %c0_i32 = arith.constant 0 : i32
    %c0_i32_0 = arith.constant 0 : i32
    %c0_i32_1 = arith.constant 0 : i32
    return %c0_i32, %c0_i32_0 : i32, i32
  }
  func.func @transform_7(%arg0: i32) -> (i32, i32) {
    %c0_i32 = arith.constant 0 : i32
    %c0_i32_0 = arith.constant 0 : i32
    %c0_i32_1 = arith.constant 0 : i32
    return %c0_i32, %c0_i32_0 : i32, i32
  }
  func.func @transform_8(%arg0: i32) -> (i32, i32) {
    %c0_i32 = arith.constant 0 : i32
    %c0_i32_0 = arith.constant 0 : i32
    %c0_i32_1 = arith.constant 0 : i32
    return %c0_i32, %c0_i32_0 : i32, i32
  }
  func.func @transform_9(%arg0: i32) -> (i32, i32) {
    %c0_i32 = arith.constant 0 : i32
    %c0_i32_0 = arith.constant 0 : i32
    %c0_i32_1 = arith.constant 0 : i32
    return %c0_i32, %c0_i32_0 : i32, i32
  }
  func.func @transform_10(%arg0: i32) -> (i32, i32) {
    %c0_i32 = arith.constant 0 : i32
    %c0_i32_0 = arith.constant 0 : i32
    %c0_i32_1 = arith.constant 0 : i32
    return %c0_i32, %c0_i32_0 : i32, i32
  }
  func.func @transform_11(%arg0: i32) -> (i32, i32) {
    %c0_i32 = arith.constant 0 : i32
    %c0_i32_0 = arith.constant 0 : i32
    %c0_i32_1 = arith.constant 0 : i32
    return %c0_i32, %c0_i32_0 : i32, i32
  }
  func.func @transform_12(%arg0: i32) -> (i32, i32, i32) {
    %c0_i32 = arith.constant 0 : i32
    %c0_i32_0 = arith.constant 0 : i32
    %c0_i32_1 = arith.constant 0 : i32
    return %arg0, %c0_i32, %c0_i32_0 : i32, i32, i32
  }
}

</mosaic_0001>

<bundles_post_ra>
// kernel: tpu_custom_call.1
= control target key start
LH: loop header
LB: loop body
LE: loop exit
PB: predicated region body
PF: predicated region fallthrough
CT: control target
= control target key end

     0   :  { %s1886_s0 = inlined_call_operand.vmem [shape: f32[2,16,8], index: 0, kind: input, shape index: {}]   ;;  %s1887_s1 = inlined_call_operand.vmem [shape: f32[2,8,8], index: 1, kind: input, shape index: {}]   ;;  %s1888_s2 = inlined_call_operand.vmem [shape: f32[8,64], index: 2, kind: input, shape index: {}]   ;;  %s1889_s3 = inlined_call_operand.vmem [shape: f32[1,64], index: 3, kind: input, shape index: {}]   ;;  %s1890_s4 = inlined_call_operand.vmem [shape: f32[8,64], index: 4, kind: input, shape index: {}]   ;;  %s1891_s5 = inlined_call_operand.vmem [shape: f32[1,64], index: 5, kind: input, shape index: {}]   ;;  %s1892_s6 = inlined_call_operand.vmem [shape: f32[8,64], index: 6, kind: input, shape index: {}]   ;;  %s1893_s7 = inlined_call_operand.vmem [shape: f32[1,64], index: 7, kind: input, shape index: {}]   ;;  %s1894_s8 = inlined_call_operand.hbm [shape: f32[64,128], index: 8, kind: input, shape index: {}]   ;;  %s1895_s9 = inlined_call_operand.vmem [shape: f32[1,128], index: 9, kind: input, shape index: {}]   ;;  %s1896_s10 = inlined_call_operand.hbm [shape: f32[128,768], index: 10, kind: input, shape index: {}]   ;;  %s1897_s11 = inlined_call_operand.vmem [shape: f32[1,768], index: 11, kind: input, shape index: {}]   ;;  %s1898_s12 = inlined_call_operand.hbm [shape: f32[2,1,768], index: 12, kind: output, shape index: {}]  }
   0x1   :  { %1902 = sst [smem:[#allocation14_spill]] %s1894_s8 }
   0x2   :  { %17 = vsyncpa [#allocation3], 0 }
   0x3   :  { %18 = vsyncpa [#allocation6], 0 }
   0x4   :  { %19 = vsyncpa [#allocation4], 0 }
   0x5   :  { %21 = vsyncpa [#allocation4 + $0x1], 0  ;;  %s1696_s21 = smov 0   ;;  %s1698_s22 = smov 0  }
   0x6   :  { %s1700_s23 = smov 0   ;;  %s1702_s24 = smov 0  }
   0x7 LB: > { %1903 = sst [smem:[#allocation11_spill]] %s1613_s23  ;;  %s1717_s25 = sadd.s32 4294967295, %s1617_s24   ;;  %s1617_s24 = sphi %s1702_s24, %s1910_s24   ;;  %s1613_s23 = sphi %s1700_s23, %s1912_s23   ;;  %s1609_s22 = sphi %s1698_s22, %s1914_s22   ;;  %s1605_s21 = sphi %s1696_s21, %s1913_s21  }
   0x8   : > { %s1344_s26 = sadd.s32 4294967294, %s1617_s24   ;;  %s1721_s27 = sadd.s32 1, %s1617_s24  }
   0x9   : > { %1904 = sst [smem:[#allocation12_spill]] %s1721_s27  ;;  %s296_s28 = sadd.s32 1, %s1613_s23 }
   0xa   : > { %s293_s29 = ssub.s32 %s1617_s24, %s1721_s27  ;;  %p306_p0 = scmp.ne.s32.totalorder %s1613_s23, %s1609_s22 }
   0xb   : > { %p294_p1 = scmp.eq.s32.totalorder %s293_s29, 0  ;;  %p307_p2 = scmp.eq.s32.totalorder %s1717_s25, 1 }
   0xc   : > { %p312_p3 = scmp.ne.s32.totalorder %s1609_s22, %s1605_s21  ;;  %p313_p4 = scmp.eq.s32.totalorder %s1344_s26, 1 }
   0xd   : > { %s1732_s30 = scalar_select %p294_p1, %s1613_s23, %s296_s28  }
   0xe   : > { %p1734_p5 = por %p307_p2, %p306_p0  ;;  %p1738_p6 = por %p313_p4, %p312_p3 }
   0xf   : > { %1905 = sst [smem:[#allocation13_spill]] %s1732_s30  ;;  %p1345_p7 = scmp.ge.s32.totalorder %s1617_s24, 1 }
  0x10   : > { %p320_p8 = scmp.lt.s32.totalorder %s1617_s24, 3  ;;  %p1404_p9 = scmp.eq.s32.totalorder %s1717_s25, 0 }
  0x11   : > { %s1909_s8 = sld [smem:[#allocation14_spill]]  ;;  %s1619_s19 = smov [#allocation2]  }
  0x12   : > { %p1745_p10 = pnand %p1345_p7, %p320_p8  ;;  %s351_s20 = sshll.u32 %s1619_s19, 4  ;;  %s352_s20 = int_to_ptr.vmem [resolvable:$true] %s351_s20 }
  0x13   : > { %s366_s29 = sshll.u32 %s1896_s10, 4  ;;  %s1620_s30 = smov 128   ;;  %s367_s29 = int_to_ptr.hbm [resolvable:$true] %s366_s29 }
  0x14   : > { %p1393_p11 = pneg %p1745_p10  ;;  %s1621_s23 = smov 8  }
  0x15   : > { %s1622_s27 = smov [#allocation5]   ;;  %s1623_s17 = smov 768  }
  0x16   : > { %p1394_p12 = pnand %p1404_p9, %p1393_p11  ;;  %s368_s16 = sshll.u32 %s1622_s27, 4  ;;  %s369_s16 = int_to_ptr.vmem [resolvable:$true] %s368_s16 }
  0x17   : > { %s349_s18 = sshll.u32 %s1909_s8, 4  ;;  %s1624_s8 = smov 48   ;;  %s350_s18 = int_to_ptr.hbm [resolvable:$true] %s349_s18 }
  0x18   : > { %1396 = dma.hbm_to_vmem [thread:$0]  (!%p1394_p12), %s350_s18, 1024, %s352_s20, [#allocation3], %s1620_s30, %s1620_s30, %s1621_s23  }
  0x19   : > { %1399 = dma.hbm_to_vmem [thread:$0]  (!%p1394_p12), %s367_s29, 12288, %s369_s16, [#allocation6], %s1623_s17, %s1623_s17, %s1624_s8  }
  0x1a   : > { %402 = sbr.rel (%p1745_p10) target bundleno = 1130 (0x46a), region = 68 }
  0x1f   : > { %1592 = dma.done.wait (%p1404_p9), [#allocation3], 1024  }
  0x20   : > { %1594 = vsyncadd (%p1404_p9), [#allocation3], 4294966272 }
  0x21   : > { %1596 = dma.done.wait (%p1404_p9), [#allocation6], 12288  }
  0x22   : > { %1598 = vsyncadd (%p1404_p9), [#allocation6], 4294955008  ;;  %p454_p13 = scmp.lt.s32.totalorder %s1717_s25, 1  ;;  %vm471_vm0 = vcmask 64512   ;;  %v466_v0 = vld [vmem:[%s1888_s2] sm:$0xff]  ;;  %s1625_s19 = smov 112  }
  0x23   : > { %v495_v1 = vld [vmem:[%s1890_s4] sm:$0xff]  ;;  %490 = vmatpush.msra.mxu0 %v466_v0  ;;  %s1626_s20 = smov 96   ;;  %vm557_vm1 = vcmask 130048   ;;  %s1628_s16 = smov 16  }
  0x24   : > { %s455_s23 = scalar_select %p454_p13, %s1717_s25, 1  ;;  %521 = vmatpush.msra.mxu1 %v495_v1  ;;  %v529_v5 = vld [vmem:[%s1892_s6] sm:$0xff] }
  0x25   : > { %549 = vmatpush.msrb.mxu0 %v529_v5  ;;  %1380 = vmatpush.msra.mxu2 %v529_v5  ;;  %v1468_v6 = vld [vmem:[%s1889_s3] ss:$0 sm:$0xff]  ;;  %s1629_s17 = smov 48  }
  0x26   : > { %s1354_s8 = sshll.u32 %s455_s23, 3  ;;  %s1379_s27 = sshll.u32 %s455_s23, 4  ;;  %v1469_v7 = vld [vmem:[%s1891_s5] ss:$0 sm:$0xff] }
  0x27   : > { %s462_s18 = scalar_lea.vmem %s1887_s1, %s1354_s8  ;;  %s458_s26 = scalar_lea.vmem %s1886_s0, %s1379_s27  ;;  %v1470_v27 = vld [vmem:[%s1893_s7] ss:$0 sm:$0xff] }
  0x28   : > { %v465_v2 = vld [vmem:[%s462_s18] sm:$0xff]  ;;  %v464_v4 = vld [vmem:[%s458_s26 + $0x8] sm:$0xff]  ;;  %s1630_s23 = smov 32   ;;  %s451_s18 = sand.u32 1, %s1609_s22  }
  0x29   : > { %v463_v3 = vld [vmem:[%s458_s26] sm:$0xff]  ;;  %1355 = vmatmul.msk.f32.vlgmr.msra.gmra.mxu0 %vm471_vm0, %v465_v2  ;;  %1359 = vmatmul.msk.f32.vlgmr.msra.gmra.mxu2 %vm471_vm0, %v464_v4  ;;  %s1627_s26 = smov 80  }
  0x2a   : > { %1356 = vmatmul.msk.f32.vlgmr.msra.gmra.mxu1 %vm471_vm0, %v463_v3 }
  0x31   : > { %1358 = vmatmul.msk.f32.vlgmr.msrb.gmra.mxu0 %vm471_vm0, %v463_v3 }
  0x32   : > { %1357 = vmatmul.msk.f32.gmra.mxu1 %vm471_vm0, %v464_v4 }
  0xa6   : > { %v492_v8 = vpop.f32.mrf.mxu0 }
  0xa7   : > { %v523_v9 = vpop.f32.mrf.mxu1  ;;  %v493_v10 = vadd.f32 %v1468_v6, %v492_v8 }
  0xa8   : > { %v524_v11 = vadd.f32 %v1469_v7, %v523_v9 }
  0xa9   : > { %643 = vrot.lane.b32.xlu1 %v493_v10, %s1625_s19 }
  0xaa   : > { %741 = vrot.lane.b32.xlu2 %v524_v11, %s1626_s20 }
  0xac   : > { %v554_v29 = vpop.f32.mrf.mxu2 }
  0xad   : > { %v555_v30 = vadd.f32 %v1470_v27, %v554_v29 }
  0xae   : > { %v551_v20 = vpop.f32.mrf.mxu0 }
  0xaf   : > { %v526_v12 = vpop.f32.mrf.mxu1  ;;  %v552_v28 = vadd.f32 %v1470_v27, %v551_v20 }
  0xb0   : > { %v527_v13 = vadd.f32 %v1469_v7, %v526_v12 }
  0xb1   : > { %v1453_v31 = vpack.i.bf16 %v552_v28, %v555_v30 }
  0xb2   : > { %743 = vrot.lane.b32.xlu1 %v527_v13, %s1626_s20  ;;  %647 = vrot.lane.b32.xlu0 %v527_v13, %s1625_s19 }
  0xb3   : > { %1360 = vmatpush.xpose.msk.msra.mxu0 %vm557_vm1, %v527_v13  ;;  %837 = vrot.lane.b32.xlu2 %v527_v13, %s1627_s26 }
  0xb7   : > { %1361 = vmatpush.xpose.msk.msra.mxu0 %vm557_vm1, %v524_v11 }
  0xba   : > { %1362 = vmatmul.msk.f32.vlgmr.msra.gmra.mxu0 %vm557_vm1, %v493_v10  ;;  %645 = vrot.lane.b32.xlu0 %v524_v11, %s1625_s19 }
  0xbb   : > { %739 = vrot.lane.b32.xlu1 %v493_v10, %s1626_s20  ;;  %833 = vrot.lane.b32.xlu2 %v493_v10, %s1627_s26 }
  0xbc   : > { %611 = vmatpush.msrb.mxu0 %v555_v30 }
  0xbe   : > { %612 = vmatpush.msrb.mxu0 %v552_v28 }
  0xc2   : > { %835 = vrot.lane.b32.xlu0 %v524_v11, %s1627_s26 }
 0x104   : > { %v742_v14 = vpop.permute.xlu2 %741 }
 0x10d   : > { %v838_v15 = vpop.permute.xlu2 %837 }
 0x10e   : > { %1372 = vmatpush.xpose.msk.msra.mxu3 %vm557_vm1, %v838_v15 }
 0x115   : > { %v834_v22 = vpop.permute.xlu2 %833 }
 0x11b   : > { %v644_v16 = vpop.permute.xlu1 %643 }
 0x124   : > { %v648_v17 = vpop.permute.xlu0 %647  ;;  %v744_v19 = vpop.permute.xlu1 %743 }
 0x125   : > { %1364 = vmatpush.xpose.msk.msrb.mxu1 %vm557_vm1, %v648_v17 }
 0x12c   : > { %v646_v18 = vpop.permute.xlu0 %645 }
 0x12d   : > { %1365 = vmatpush.xpose.msk.msrb.mxu1 %vm557_vm1, %v646_v18  ;;  %v740_v23 = vpop.permute.xlu1 %739 }
 0x130   : > { %1366 = vmatmul.msk.f32.vlgmr.msrb.gmra.mxu1 %vm557_vm1, %v644_v16 }
 0x131   : > { %1368 = vmatpush.xpose.msk.msra.mxu1 %vm557_vm1, %v744_v19 }
 0x134   : > { %v836_v21 = vpop.permute.xlu0 %835 }
 0x135   : > { %1369 = vmatpush.xpose.msk.msra.mxu1 %vm557_vm1, %v742_v14  ;;  %1373 = vmatpush.xpose.msk.msra.mxu3 %vm557_vm1, %v836_v21 }
 0x137   : > { %v584_v24 = vpop.f32.mrf.mxu0 }
 0x138   : > { %v587_v25 = vmul.f32 0.25, %v584_v24  ;;  %1370 = vmatmul.msk.f32.vlgmr.msra.gmra.mxu1 %vm557_vm1, %v740_v23  ;;  %1374 = vmatmul.msk.f32.vlgmr.msra.gmra.mxu3 %vm557_vm1, %v834_v22 }
 0x13a   : > { %v588_v26 = vsel %vm557_vm1, %v587_v25, -inf }
 0x13b   : > { %589 = vmax.xlane.f32.xlu0 %v588_v26 }
 0x14f   : > { %1454 = vrot.lane.b32.xlu0 %v1453_v31, %s1625_s19  ;;  %s1850_s19 = smul.u32 6, %s451_s18 }
 0x1ad   : > { %v672_v32 = vpop.f32.mrf.mxu1 }
 0x1ae   : > { %v675_v33 = vmul.f32 0.25, %v672_v32  ;;  %v590_v34 = vpop.xlane.xlu0 %589 }
 0x1af   : > { %v591_v35 = vsub.f32 %v587_v25, %v590_v34 }
 0x1b0   : > { %v676_v36 = vsel %vm557_vm1, %v675_v33, -inf }
 0x1b1   : > { %v592_v37 = vmul.f32 1.442695, %v591_v35  ;;  %677 = vmax.xlane.f32.xlu1 %v676_v36 }
 0x1b3   : > { %1471 = vpow2.f32 %v592_v37 }
 0x1b5   : > { %v768_v42 = vpop.f32.mrf.mxu1 }
 0x1b6   : > { %v771_v43 = vmul.f32 0.25, %v768_v42 }
 0x1b8   : > { %v772_v44 = vsel %vm557_vm1, %v771_v43, -inf }
 0x1b9   : > { %v1472_v38 = vpop.eup %1471 }
 0x1ba   : > { %1363 = vmatmul.msk.f32.vlgmr.msrb.gmra.mxu0 %vm557_vm1, %v1472_v38  ;;  %v617_v56 = vsel %vm557_vm1, %v1472_v38, 0.0 }
 0x1bb   : > { %v862_v39 = vpop.f32.mrf.mxu3 }
 0x1bc   : > { %v865_v40 = vmul.f32 0.25, %v862_v39 }
 0x1be   : > { %v866_v41 = vsel %vm557_vm1, %v865_v40, -inf }
 0x1bf   : > { %867 = vmax.xlane.f32.xlu2 %v866_v41 }
 0x1c1   : > { %v1455_v45 = vpop.permute.xlu0 %1454 }
 0x1c2   : > { %v1457_v46 = vunpack.i.h.bf16 %v1455_v45  ;;  %v1456_v47 = vunpack.i.l.bf16 %v1455_v45 }
 0x1c4   : > { %707 = vmatpush.msra.mxu0 %v1456_v47 }
 0x1c6   : > { %708 = vmatpush.msra.mxu0 %v1457_v46 }
 0x1c7   : > { %773 = vmax.xlane.f32.xlu2 %v772_v44 }
 0x1ca   : > { %1459 = vrot.lane.b32.xlu1 %v1453_v31, %s1626_s20  ;;  %s1382_s20 = smul.u32 6, %s1717_s25  ;;  %s453_s25 = scalar_lea.vmem [#allocation7], %s1850_s19 }
 0x1cb   : > { %s1567_s19 = scalar_lea.hbm %s1898_s12, 12 }
 0x1cc   : > { %s1246_s29 = scalar_lea.hbm %s1898_s12, %s1382_s20 }
 0x1df   : > { %1464 = vrot.lane.b32.xlu2 %v1453_v31, %s1627_s26 }
 0x224   : > { %v678_v48 = vpop.xlane.xlu1 %677 }
 0x225   : > { %v679_v49 = vsub.f32 %v675_v33, %v678_v48 }
 0x227   : > { %v680_v50 = vmul.f32 1.442695, %v679_v49 }
 0x229   : > { %1473 = vpow2.f32 %v680_v50 }
 0x22f   : > { %v1474_v51 = vpop.eup %1473 }
 0x230   : > { %1367 = vmatmul.msk.f32.vlgmr.msra.gmra.mxu0 %vm557_vm1, %v1474_v51  ;;  %v713_v52 = vsel %vm557_vm1, %v1474_v51, 0.0 }
 0x231   : > { %714 = vadd.xlane.f32.xlu0 %v713_v52 }
 0x232   : > { %v868_v53 = vpop.xlane.xlu2 %867 }
 0x233   : > { %v869_v54 = vsub.f32 %v865_v40, %v868_v53 }
 0x235   : > { %v870_v55 = vmul.f32 1.442695, %v869_v54 }
 0x237   : > { %1475 = vpow2.f32 %v870_v55  ;;  %v1831_v9 = vpop.f32.mrf.mxu0 }
 0x239   : > { %618 = vadd.xlane.f32.xlu0 %v617_v56 }
 0x23a   : > { %v774_v57 = vpop.xlane.xlu2 %773 }
 0x23b   : > { %v775_v58 = vsub.f32 %v771_v43, %v774_v57 }
 0x23c   : > { %v1460_v59 = vpop.permute.xlu1 %1459 }
 0x23d   : > { %v1476_v60 = vpop.eup %1475  ;;  %v776_v61 = vmul.f32 1.442695, %v775_v58  ;;  %v1461_v62 = vunpack.i.l.bf16 %v1460_v59  ;;  %v1462_v0 = vunpack.i.h.bf16 %v1460_v59 }
 0x23e   : > { %v901_v63 = vsel %vm557_vm1, %v1476_v60, 0.0 }
 0x23f   : > { %1477 = vpow2.f32 %v776_v61  ;;  %801 = vmatpush.msrb.mxu2 %v1461_v62  ;;  %902 = vadd.xlane.f32.xlu2 %v901_v63 }
 0x241   : > { %802 = vmatpush.msrb.mxu2 %v1462_v0 }
 0x242   : > { %v1465_v1 = vpop.permute.xlu2 %1464 }
 0x243   : > { %v1466_v2 = vunpack.i.l.bf16 %v1465_v1  ;;  %v1467_v4 = vunpack.i.h.bf16 %v1465_v1 }
 0x245   : > { %v1478_v3 = vpop.eup %1477  ;;  %895 = vmatpush.msrb.mxu0 %v1466_v2 }
 0x246   : > { %1371 = vmatmul.msk.f32.vlgmr.msrb.gmra.mxu2 %vm557_vm1, %v1478_v3  ;;  %v807_v5 = vsel %vm557_vm1, %v1478_v3, 0.0 }
 0x247   : > { %808 = vadd.xlane.f32.xlu1 %v807_v5  ;;  %896 = vmatpush.msrb.mxu0 %v1467_v4 }
 0x248   : > { %1375 = vmatmul.msk.f32.vlgmr.msrb.gmra.mxu0 %vm557_vm1, %v1476_v60 }
 0x2a4   : > { %v715_v6 = vpop.xlane.xlu0 %714 }
 0x2a5   : > { %1479 = vrcp.f32 %v715_v6  ;;  %v727_v11 = vand.u32 2147483648, %v715_v6  ;;  %v725_v13 = vand.u32 2147483647, %v715_v6  ;;  %vm721_vm3 = vweird.f32 %v715_v6 }
 0x2a7   : > { %v728_v16 = vor.u32 1.1754944e-38, %v727_v11  ;;  %vm726_vm5 = vcmp.eq.f32.partialorder %v725_v13, 8.507059e+37  ;;  %v950_v11 = vld [vmem:[#allocation2 + $0x30] sm:$0xff]  ;;  %v949_v13 = vld [vmem:[#allocation2 + $0x28] sm:$0xff] }
 0x2ab   : > { %v1480_v7 = vpop.eup %1479 }
 0x2ac   : > { %v717_v8 = vmul.f32 %v1480_v7, %v715_v6  ;;  %vm722_vm2 = vweird.f32 %v1480_v7  ;;  %v619_v6 = vpop.xlane.xlu0 %618 }
 0x2ad   : > { %vm723_vm4 = vmor %vm721_vm3, %vm722_vm2  ;;  %v710_v18 = vpop.f32.mrf.mxu0  ;;  %vm625_vm15 = vweird.f32 %v619_v6  ;;  %vm940_vm3 = vcmask 261120  }
 0x2ae   : > { %v718_v10 = vsub.f32 1.0, %v717_v8 }
 0x2b0   : > { %v719_v12 = vmul.f32 %v1480_v7, %v718_v10  ;;  %v951_v10 = vld [vmem:[#allocation2 + $0x38] sm:$0xff] }
 0x2b1   : > { %965 = vmatpush.msrb.mxu1 %v951_v10  ;;  %v997_v10 = vld [vmem:[#allocation5 + $0x98] sm:$0xff] }
 0x2b2   : > { %v720_v14 = vadd.f32 %v1480_v7, %v719_v12  ;;  %v903_v15 = vpop.xlane.xlu2 %902 }
 0x2b3   : > { %1481 = vrcp.f32 %v903_v15  ;;  %v915_v31 = vand.u32 2147483648, %v903_v15  ;;  %vm909_vm7 = vweird.f32 %v903_v15  ;;  %v913_v33 = vand.u32 2147483647, %v903_v15  ;;  %966 = vmatpush.msrb.mxu1 %v950_v11 }
 0x2b4   : > { %v724_v17 = vsel %vm723_vm4, %v1480_v7, %v720_v14  ;;  %v948_v14 = vld [vmem:[#allocation2 + $0x20] sm:$0xff]  ;;  %vm942_vm4 = vcmask 392192  }
 0x2b5   : > { %v729_v19 = vsel %vm726_vm5, %v728_v16, %v724_v17  ;;  %v916_v38 = vor.u32 1.1754944e-38, %v915_v31  ;;  %vm914_vm9 = vcmp.eq.f32.partialorder %v913_v33, 8.507059e+37  ;;  %967 = vmatpush.msrb.mxu1 %v949_v13  ;;  %v947_v16 = vld [vmem:[#allocation2 + $0x18] sm:$0xff]  ;;  %v946_v17 = vld [vmem:[#allocation2 + $0x10] sm:$0xff]  ;;  %v1063_v31 = vld [vmem:[#allocation5 + $0x2a8] sm:$0xff]  ;;  %vm953_vm5 = vcmask 523264  }
 0x2b6   : > { %v730_v20 = vmul.f32 %v729_v19, %v710_v18  ;;  %v945_v19 = vld [vmem:[#allocation2 + $0x8] sm:$0xff]  ;;  %v1057_v33 = vld [vmem:[#allocation5 + $0x278] sm:$0xff] }
 0x2b7   : > { %968 = vmatpush.msrb.mxu1 %v948_v14  ;;  %v1023_v13 = vld [vmem:[#allocation5 + $0x168] sm:$0xff]  ;;  %v990_v14 = vld [vmem:[#allocation5 + $0x60] sm:$0xff] }
 0x2b8   : > { %v731_v21 = vsel %vm557_vm1, %v730_v20, 0.0  ;;  %v631_v20 = vand.u32 2147483648, %v619_v6 }
 0x2b9   : > { %v1482_v22 = vpop.eup %1481  ;;  %v732_v23 = vrot.slane %v731_v21, 4  ;;  %969 = vmatpush.msrb.mxu1 %v947_v16  ;;  %v1016_v16 = vld [vmem:[#allocation5 + $0x130] sm:$0xff] }
 0x2ba   : > { %v905_v24 = vmul.f32 %v1482_v22, %v903_v15  ;;  %v809_v25 = vpop.xlane.xlu1 %808  ;;  %vm910_vm6 = vweird.f32 %v1482_v22 }
 0x2bb   : > { %v733_v26 = vadd.f32 %v732_v23, %v731_v21  ;;  %1483 = vrcp.f32 %v809_v25  ;;  %vm911_vm8 = vmor %vm909_vm7, %vm910_vm6  ;;  %v821_v44 = vand.u32 2147483648, %v809_v25  ;;  %v819_v47 = vand.u32 2147483647, %v809_v25  ;;  %970 = vmatpush.msrb.mxu1 %v946_v17  ;;  %v1017_v17 = vld [vmem:[#allocation5 + $0x138] sm:$0xff] }
 0x2bc   : > { %v906_v27 = vsub.f32 1.0, %v905_v24  ;;  %vm815_vm11 = vweird.f32 %v809_v25  ;;  %1485 = vrcp.f32 %v619_v6  ;;  %v629_v21 = vand.u32 2147483647, %v619_v6 }
 0x2bd   : > { %v734_v28 = vrot.slane %v733_v26, 2  ;;  %v822_v51 = vor.u32 1.1754944e-38, %v821_v44  ;;  %vm820_vm13 = vcmp.eq.f32.partialorder %v819_v47, 8.507059e+37  ;;  %971 = vmatpush.msrb.mxu1 %v945_v19  ;;  %v632_v23 = vor.u32 1.1754944e-38, %v631_v20  ;;  %v1065_v44 = vld [vmem:[#allocation5 + $0x2b8] sm:$0xff]  ;;  %v984_v19 = vld [vmem:[#allocation5 + $0x30] sm:$0xff] }
 0x2be   : > { %v907_v29 = vmul.f32 %v1482_v22, %v906_v27  ;;  %vm630_vm2 = vcmp.eq.f32.partialorder %v629_v21, 8.507059e+37  ;;  %v985_v20 = vld [vmem:[#allocation5 + $0x38] sm:$0xff]  ;;  %vm1221_vm6 = vcmask 1041408   ;;  %vm1223_vm7 = vcmask 1043459  }
 0x2bf   : > { %v735_v30 = vadd.f32 %v734_v28, %v733_v26  ;;  %v944_v26 = vld [vmem:[#allocation2] sm:$0xff]  ;;  %v1068_v28 = vld [vmem:[#allocation5 + $0x2d0] sm:$0xff] }
 0x2c0   : > { %v908_v32 = vadd.f32 %v1482_v22, %v907_v29  ;;  %972 = vmatpush.msrb.mxu1 %v944_v26  ;;  %v1069_v29 = vld [vmem:[#allocation5 + $0x2d8] sm:$0xff]  ;;  %1088 = vmatpush.msra.mxu2 %v1068_v28  ;;  %v1072_v28 = vld [vmem:[#allocation5 + $0x2f0] sm:$0xff] }
 0x2c1   : > { %v1484_v34 = vpop.eup %1483  ;;  %v736_v35 = vrot.slane %v735_v30, 1  ;;  %1108 = vmatpush.msrb.mxu3 %v1069_v29 }
 0x2c2   : > { %v811_v36 = vmul.f32 %v1484_v34, %v809_v25  ;;  %v912_v37 = vsel %vm911_vm8, %v1482_v22, %v908_v32  ;;  %vm816_vm10 = vweird.f32 %v1484_v34  ;;  %v1486_v7 = vpop.eup %1485  ;;  %v1056_v32 = vld [vmem:[#allocation5 + $0x270] sm:$0xff]  ;;  %vm1225_vm8 = vcmask 1044483  }
 0x2c3   : > { %v737_v39 = vadd.f32 %v736_v35, %v735_v30  ;;  %v917_v42 = vsel %vm914_vm9, %v916_v38, %v912_v37  ;;  %vm817_vm12 = vmor %vm815_vm11, %vm816_vm10  ;;  %v621_v8 = vmul.f32 %v1486_v7, %v619_v6  ;;  %vm626_vm14 = vweird.f32 %v1486_v7  ;;  %v1062_v30 = vld [vmem:[#allocation5 + $0x2a0] sm:$0xff]  ;;  %1109 = vmatpush.msrb.mxu3 %v1063_v31  ;;  %v1045_v37 = vld [vmem:[#allocation5 + $0x218] sm:$0xff] }
 0x2c4   : > { %v812_v40 = vsub.f32 1.0, %v811_v36  ;;  %vm627_vm0 = vmor %vm625_vm15, %vm626_vm14  ;;  %1089 = vmatpush.msra.mxu2 %v1062_v30  ;;  %v1050_v35 = vld [vmem:[#allocation5 + $0x240] sm:$0xff]  ;;  %v1051_v36 = vld [vmem:[#allocation5 + $0x248] sm:$0xff]  ;;  %vm1227_vm9 = vcmask 1042432  }
 0x2c5   : > { %v898_v41 = vpop.f32.mrf.mxu0  ;;  %v738_v43 = vmul.f32 0.125, %v737_v39  ;;  %v622_v12 = vsub.f32 1.0, %v621_v8  ;;  %1110 = vmatpush.msrb.mxu3 %v1057_v33  ;;  %v1038_v39 = vld [vmem:[#allocation5 + $0x1e0] sm:$0xff]  ;;  %v1028_v6 = vld [vmem:[#allocation5 + $0x190] sm:$0xff]  ;;  %v1073_v31 = vld [vmem:[#allocation5 + $0x2f8] sm:$0xff] }
 0x2c6   : > { %v918_v45 = vmul.f32 %v917_v42, %v898_v41  ;;  %v813_v46 = vmul.f32 %v1484_v34, %v812_v40  ;;  %1090 = vmatpush.msra.mxu2 %v1056_v32  ;;  %v1039_v40 = vld [vmem:[#allocation5 + $0x1e8] sm:$0xff]  ;;  %v1070_v41 = vld [vmem:[#allocation5 + $0x2e0] sm:$0xff]  ;;  %v996_v8 = vld [vmem:[#allocation5 + $0x90] sm:$0xff] }
 0x2c7   : > { %928 = vrot.lane.b32.xlu1 %v738_v43, %s1628_s16  ;;  %v623_v15 = vmul.f32 %v1486_v7, %v622_v12  ;;  %1111 = vmatpush.msrb.mxu3 %v1051_v36  ;;  %v1071_v42 = vld [vmem:[#allocation5 + $0x2e8] sm:$0xff]  ;;  %v1064_v43 = vld [vmem:[#allocation5 + $0x2b0] sm:$0xff]  ;;  %v1022_v12 = vld [vmem:[#allocation5 + $0x160] sm:$0xff]  ;;  %s1248_s16 = sshll.u32 %s453_s25, 4  ;;  %s1249_s16 = int_to_ptr.vmem [resolvable:$true] %s1248_s16 }
 0x2c8   : > { %v919_v48 = vsel %vm557_vm1, %v918_v45, 0.0  ;;  %v814_v49 = vadd.f32 %v1484_v34, %v813_v46  ;;  %1091 = vmatpush.msra.mxu2 %v1050_v35  ;;  %v1032_v45 = vld [vmem:[#allocation5 + $0x1b0] sm:$0xff]  ;;  %v1033_v46 = vld [vmem:[#allocation5 + $0x1b8] sm:$0xff]  ;;  %1128 = vmatpush.msra.mxu0 %v1070_v41  ;;  %v1067_v36 = vld [vmem:[#allocation5 + $0x2c8] sm:$0xff] }
 0x2c9   : > { %v920_v50 = vrot.slane %v919_v48, 4  ;;  %v804_v54 = vpop.f32.mrf.mxu2  ;;  %v624_v18 = vadd.f32 %v1486_v7, %v623_v15  ;;  %1112 = vmatpush.msrb.mxu3 %v1045_v37  ;;  %1148 = vmatpush.msra.mxu1 %v1071_v42  ;;  %v991_v15 = vld [vmem:[#allocation5 + $0x68] sm:$0xff]  ;;  %v1004_v32 = vld [vmem:[#allocation5 + $0xd0] sm:$0xff]  ;;  %v1005_v35 = vld [vmem:[#allocation5 + $0xd8] sm:$0xff] }
 0x2ca   : > { %v818_v52 = vsel %vm817_vm12, %v1484_v34, %v814_v49  ;;  %v1059_v49 = vld [vmem:[#allocation5 + $0x288] sm:$0xff]  ;;  %1129 = vmatpush.msra.mxu0 %v1064_v43  ;;  %v1060_v37 = vld [vmem:[#allocation5 + $0x290] sm:$0xff]  ;;  %v1049_v43 = vld [vmem:[#allocation5 + $0x238] sm:$0xff] }
 0x2cb   : > { %v921_v53 = vadd.f32 %v920_v50, %v919_v48  ;;  %v823_v55 = vsel %vm820_vm13, %v822_v51, %v818_v52  ;;  %v628_v22 = vsel %vm627_vm0, %v1486_v7, %v624_v18  ;;  %1113 = vmatpush.msrb.mxu3 %v1039_v40  ;;  %v1058_v48 = vld [vmem:[#allocation5 + $0x280] sm:$0xff]  ;;  %v1027_v51 = vld [vmem:[#allocation5 + $0x188] sm:$0xff]  ;;  %1149 = vmatpush.msra.mxu1 %v1065_v44  ;;  %v1052_v52 = vld [vmem:[#allocation5 + $0x250] sm:$0xff] }
 0x2cc   : > { %v824_v56 = vmul.f32 %v823_v55, %v804_v54  ;;  %v633_v24 = vsel %vm630_vm2, %v632_v23, %v628_v22  ;;  %v1026_v50 = vld [vmem:[#allocation5 + $0x180] sm:$0xff]  ;;  %v1020_v54 = vld [vmem:[#allocation5 + $0x150] sm:$0xff]  ;;  %v1021_v55 = vld [vmem:[#allocation5 + $0x158] sm:$0xff]  ;;  %1130 = vmatpush.msra.mxu0 %v1058_v48 }
 0x2cd   : > { %v922_v57 = vrot.slane %v921_v53, 2  ;;  %v634_v25 = vmul.f32 %v633_v24, %v1831_v9  ;;  %v1044_v9 = vld [vmem:[#allocation5 + $0x210] sm:$0xff]  ;;  %1114 = vmatpush.msrb.mxu3 %v1033_v46  ;;  %1150 = vmatpush.msra.mxu1 %v1059_v49  ;;  %v1029_v7 = vld [vmem:[#allocation5 + $0x198] sm:$0xff]  ;;  %v1010_v22 = vld [vmem:[#allocation5 + $0x100] sm:$0xff] }
 0x2ce   : > { %v825_v58 = vsel %vm557_vm1, %v824_v56, 0.0  ;;  %1092 = vmatpush.msra.mxu2 %v1044_v9  ;;  %1131 = vmatpush.msra.mxu0 %v1052_v52  ;;  %v1011_v23 = vld [vmem:[#allocation5 + $0x108] sm:$0xff]  ;;  %v978_v24 = vld [vmem:[#allocation5] sm:$0xff]  ;;  %v1048_v42 = vld [vmem:[#allocation5 + $0x230] sm:$0xff] }
 0x2cf   : > { %v923_v59 = vadd.f32 %v922_v57, %v921_v53  ;;  %v826_v60 = vrot.slane %v825_v58, 4  ;;  %v635_v27 = vsel %vm557_vm1, %v634_v25, 0.0  ;;  %v1053_v53 = vld [vmem:[#allocation5 + $0x258] sm:$0xff]  ;;  %1115 = vmatpush.msrb.mxu3 %v1027_v51  ;;  %v1046_v57 = vld [vmem:[#allocation5 + $0x220] sm:$0xff]  ;;  %v979_v25 = vld [vmem:[#allocation5 + $0x8] sm:$0xff] }
 0x2d0   : > { %v636_v34 = vrot.slane %v635_v27, 4  ;;  %1093 = vmatpush.msra.mxu2 %v1038_v39  ;;  %1151 = vmatpush.msra.mxu1 %v1053_v53  ;;  %v998_v9 = vld [vmem:[#allocation5 + $0xa0] sm:$0xff]  ;;  %v1061_v39 = vld [vmem:[#allocation5 + $0x298] sm:$0xff]  ;;  %v1055_v41 = vld [vmem:[#allocation5 + $0x268] sm:$0xff] }
 0x2d1   : > { %v827_v61 = vadd.f32 %v826_v60, %v825_v58  ;;  %v924_v62 = vrot.slane %v923_v59, 1  ;;  %v1047_v58 = vld [vmem:[#allocation5 + $0x228] sm:$0xff]  ;;  %1116 = vmatpush.msrb.mxu3 %v1021_v55  ;;  %1132 = vmatpush.msra.mxu0 %v1046_v57  ;;  %v1054_v40 = vld [vmem:[#allocation5 + $0x260] sm:$0xff]  ;;  %v1036_v46 = vld [vmem:[#allocation5 + $0x1d0] sm:$0xff] }
 0x2d2   : > { %v637_v38 = vadd.f32 %v636_v34, %v635_v27  ;;  %1094 = vmatpush.msra.mxu2 %v1032_v45  ;;  %v1015_v60 = vld [vmem:[#allocation5 + $0x128] sm:$0xff]  ;;  %1152 = vmatpush.msra.mxu1 %v1047_v58  ;;  %v1066_v34 = vld [vmem:[#allocation5 + $0x2c0] sm:$0xff]  ;;  %v1025_v51 = vld [vmem:[#allocation5 + $0x178] sm:$0xff] }
 0x2d3   : > { %v828_v63 = vrot.slane %v827_v61, 2  ;;  %v925_v0 = vadd.f32 %v924_v62, %v923_v59  ;;  %v1014_v59 = vld [vmem:[#allocation5 + $0x120] sm:$0xff]  ;;  %v1041_v62 = vld [vmem:[#allocation5 + $0x1f8] sm:$0xff]  ;;  %1117 = vmatpush.msrb.mxu3 %v1015_v60  ;;  %v1043_v45 = vld [vmem:[#allocation5 + $0x208] sm:$0xff] }
 0x2d4   : > { %v638_v47 = vrot.slane %v637_v38, 2  ;;  %1095 = vmatpush.msra.mxu2 %v1026_v50  ;;  %1153 = vmatpush.msra.mxu1 %v1041_v62  ;;  %v1042_v44 = vld [vmem:[#allocation5 + $0x200] sm:$0xff]  ;;  %v1031_v49 = vld [vmem:[#allocation5 + $0x1a8] sm:$0xff]  ;;  %v1024_v50 = vld [vmem:[#allocation5 + $0x170] sm:$0xff] }
 0x2d5   : > { %v829_v1 = vadd.f32 %v828_v63, %v827_v61  ;;  %v926_v2 = vmul.f32 0.125, %v925_v0  ;;  %v1040_v61 = vld [vmem:[#allocation5 + $0x1f0] sm:$0xff]  ;;  %v1009_v0 = vld [vmem:[#allocation5 + $0xf8] sm:$0xff]  ;;  %v1030_v48 = vld [vmem:[#allocation5 + $0x1a0] sm:$0xff] }
 0x2d6   : > { %v639_v56 = vadd.f32 %v638_v47, %v637_v38  ;;  %1096 = vmatpush.msra.mxu2 %v1020_v54  ;;  %v1008_v63 = vld [vmem:[#allocation5 + $0xf0] sm:$0xff]  ;;  %1133 = vmatpush.msra.mxu0 %v1040_v61  ;;  %v999_v38 = vld [vmem:[#allocation5 + $0xa8] sm:$0xff]  ;;  %v1037_v47 = vld [vmem:[#allocation5 + $0x1d8] sm:$0xff] }
 0x2d7   : > { %936 = vrot.lane.b32.xlu2 %v926_v2, %s1629_s17  ;;  %v830_v3 = vrot.slane %v829_v1, 1  ;;  %v1034_v2 = vld [vmem:[#allocation5 + $0x1c0] sm:$0xff]  ;;  %1118 = vmatpush.msrb.mxu3 %v1009_v0  ;;  %v992_v52 = vld [vmem:[#allocation5 + $0x70] sm:$0xff]  ;;  %v993_v53 = vld [vmem:[#allocation5 + $0x78] sm:$0xff]  ;;  %s1250_s17 = sshll.u32 %s1246_s29, 4  ;;  %s1251_s17 = int_to_ptr.hbm [resolvable:$true] %s1250_s17 }
 0x2d8   : > { %1097 = vmatpush.msra.mxu2 %v1014_v59  ;;  %1134 = vmatpush.msra.mxu0 %v1034_v2  ;;  %v1018_v54 = vld [vmem:[#allocation5 + $0x140] sm:$0xff]  ;;  %v1019_v55 = vld [vmem:[#allocation5 + $0x148] sm:$0xff]  ;;  %v1012_v58 = vld [vmem:[#allocation5 + $0x110] sm:$0xff]  ;;  %s1561_s8 = sshra.s32 %s1251_s17, 4  ;;  %s1562_s8 = int_to_ptr.hbm [resolvable:$true] %s1561_s8 }
 0x2d9   : > { %v831_v4 = vadd.f32 %v830_v3, %v829_v1  ;;  %v640_v1 = vrot.slane %v639_v56, 1  ;;  %v1035_v3 = vld [vmem:[#allocation5 + $0x1c8] sm:$0xff]  ;;  %v1013_v59 = vld [vmem:[#allocation5 + $0x118] sm:$0xff]  ;;  %v980_v60 = vld [vmem:[#allocation5 + $0x10] sm:$0xff]  ;;  %s1563_s27 = scalar_lea.hbm %s1562_s8, 6  ;;  %p1568_p3 = scmp.lt.s32.totalorder %s1562_s8, %s1898_s12 }
 0x2da   : > { %1098 = vmatpush.msra.mxu2 %v1008_v63  ;;  %1154 = vmatpush.msra.mxu1 %v1035_v3  ;;  %v987_v57 = vld [vmem:[#allocation5 + $0x48] sm:$0xff]  ;;  %v981_v61 = vld [vmem:[#allocation5 + $0x18] sm:$0xff]  ;;  %v1006_v62 = vld [vmem:[#allocation5 + $0xe0] sm:$0xff]  ;;  %p1564_p0 = scmp.ne.s32.totalorder %s1562_s8, %s1563_s27  ;;  %p1569_p4 = scmp.lt.s32.totalorder %s1567_s19, %s1563_s27 }
 0x2db   : > { %v832_v5 = vmul.f32 0.125, %v831_v4  ;;  %v1002_v4 = vld [vmem:[#allocation5 + $0xc0] sm:$0xff]  ;;  %v641_v11 = vadd.f32 %v640_v1, %v639_v56  ;;  %1135 = vmatpush.msra.mxu0 %v1028_v6  ;;  %v1007_v63 = vld [vmem:[#allocation5 + $0xe8] sm:$0xff]  ;;  %v1000_v0 = vld [vmem:[#allocation5 + $0xb0] sm:$0xff] }
 0x2dc   : > { %1099 = vmatpush.msra.mxu2 %v1002_v4  ;;  %1155 = vmatpush.msra.mxu1 %v1029_v7  ;;  %v986_v56 = vld [vmem:[#allocation5 + $0x40] sm:$0xff]  ;;  %v1001_v1 = vld [vmem:[#allocation5 + $0xb8] sm:$0xff]  ;;  %v995_v3 = vld [vmem:[#allocation5 + $0x88] sm:$0xff]  ;;  %p1565_p1 = pnand %p1564_p0, %p1734_p5  ;;  %p1570_p7 = por %p1569_p4, %p1568_p3 }
 0x2dd   : > { %932 = vrot.lane.b32.xlu0 %v832_v5, %s1630_s23  ;;  %v1003_v5 = vld [vmem:[#allocation5 + $0xc8] sm:$0xff]  ;;  %1136 = vmatpush.msra.mxu0 %v1022_v12  ;;  %v642_v21 = vmul.f32 0.125, %v641_v11  ;;  %v994_v2 = vld [vmem:[#allocation5 + $0x80] sm:$0xff]  ;;  %v988_v4 = vld [vmem:[#allocation5 + $0x50] sm:$0xff]  ;;  %s1236_s23 = scalar_lea.sflag [#allocation4], %s451_s18 }
 0x2de   : > { %1119 = vmatpush.msrb.mxu3 %v1003_v5  ;;  %1100 = vmatpush.msra.mxu2 %v996_v8  ;;  %v989_v5 = vld [vmem:[#allocation5 + $0x58] sm:$0xff]  ;;  %v982_v6 = vld [vmem:[#allocation5 + $0x20] sm:$0xff]  ;;  %v983_v7 = vld [vmem:[#allocation5 + $0x28] sm:$0xff]  ;;  %p1566_p2 = pneg %p1565_p1 }
 0x2df   : > { %1156 = vmatpush.msra.mxu1 %v1023_v13  ;;  %1137 = vmatpush.msra.mxu0 %v1016_v16  ;;  %v952_v8 = vld [vmem:[%s1895_s9] sm:$0x1] }
 0x2e0   : > { %1120 = vmatpush.msrb.mxu3 %v997_v10  ;;  %1101 = vmatpush.msra.mxu2 %v990_v14  ;;  %v1074_v13 = vld [vmem:[%s1897_s11] sm:$0x3f]  ;;  %p1571_p8 = pnand %p1570_p7, %p1566_p2 }
 0x2e1   : > { %1157 = vmatpush.msra.mxu1 %v1017_v17  ;;  %1138 = vmatpush.msra.mxu0 %v1010_v22  ;;  %v1077_v14 = vperm.slane %v1074_v13, 1  ;;  %v1079_v17 = vperm.slane %v1074_v13, 3  ;;  %v1076_v22 = vperm.slane %v1074_v13, 0 }
 0x2e2   : > { %1121 = vmatpush.msrb.mxu3 %v991_v15  ;;  %1102 = vmatpush.msra.mxu2 %v984_v19  ;;  %v1078_v19 = vperm.slane %v1074_v13, 2 }
 0x2e3   : > { %1158 = vmatpush.msra.mxu1 %v1011_v23  ;;  %1139 = vmatpush.msra.mxu0 %v1004_v32  ;;  %v1080_v23 = vperm.slane %v1074_v13, 4 }
 0x2e4   : > { %1122 = vmatpush.msrb.mxu3 %v985_v20  ;;  %1103 = vmatpush.msra.mxu2 %v978_v24  ;;  %v1081_v24 = vperm.slane %v1074_v13, 5 }
 0x2e5   : > { %1159 = vmatpush.msra.mxu1 %v1005_v35  ;;  %1140 = vmatpush.msra.mxu0 %v998_v9 }
 0x2e6   : > { %1123 = vmatpush.msrb.mxu3 %v979_v25  ;;  %1168 = vmatpush.msrb.mxu2 %v1072_v28 }
 0x2e7   : > { %1160 = vmatpush.msra.mxu1 %v999_v38  ;;  %1141 = vmatpush.msra.mxu0 %v992_v52 }
 0x2e8   : > { %1188 = vmatpush.msra.mxu3 %v1073_v31  ;;  %1169 = vmatpush.msrb.mxu2 %v1066_v34 }
 0x2e9   : > { %1161 = vmatpush.msra.mxu1 %v993_v53  ;;  %1142 = vmatpush.msra.mxu0 %v986_v56 }
 0x2ea   : > { %1189 = vmatpush.msra.mxu3 %v1067_v36  ;;  %1170 = vmatpush.msrb.mxu2 %v1060_v37 }
 0x2eb   : > { %1162 = vmatpush.msra.mxu1 %v987_v57  ;;  %1143 = vmatpush.msra.mxu0 %v980_v60 }
 0x2ec   : > { %1190 = vmatpush.msra.mxu3 %v1061_v39  ;;  %1171 = vmatpush.msrb.mxu2 %v1054_v40 }
 0x2ed   : > { %1163 = vmatpush.msra.mxu1 %v981_v61 }
 0x2ee   : > { %1191 = vmatpush.msra.mxu3 %v1055_v41  ;;  %1172 = vmatpush.msrb.mxu2 %v1048_v42 }
 0x2f0   : > { %1192 = vmatpush.msra.mxu3 %v1049_v43  ;;  %1173 = vmatpush.msrb.mxu2 %v1042_v44 }
 0x2f2   : > { %1193 = vmatpush.msra.mxu3 %v1043_v45  ;;  %1174 = vmatpush.msrb.mxu2 %v1036_v46 }
 0x2f4   : > { %1194 = vmatpush.msra.mxu3 %v1037_v47  ;;  %1175 = vmatpush.msrb.mxu2 %v1030_v48 }
 0x2f6   : > { %1195 = vmatpush.msra.mxu3 %v1031_v49  ;;  %1176 = vmatpush.msrb.mxu2 %v1024_v50 }
 0x2f8   : > { %1196 = vmatpush.msra.mxu3 %v1025_v51  ;;  %1177 = vmatpush.msrb.mxu2 %v1018_v54 }
 0x2fa   : > { %1197 = vmatpush.msra.mxu3 %v1019_v55  ;;  %1178 = vmatpush.msrb.mxu2 %v1012_v58 }
 0x2fc   : > { %1198 = vmatpush.msra.mxu3 %v1013_v59  ;;  %1179 = vmatpush.msrb.mxu2 %v1006_v62 }
 0x2fe   : > { %1199 = vmatpush.msra.mxu3 %v1007_v63  ;;  %1180 = vmatpush.msrb.mxu2 %v1000_v0 }
 0x300   : > { %1200 = vmatpush.msra.mxu3 %v1001_v1  ;;  %1181 = vmatpush.msrb.mxu2 %v994_v2 }
 0x302   : > { %1201 = vmatpush.msra.mxu3 %v995_v3  ;;  %1182 = vmatpush.msrb.mxu2 %v988_v4 }
 0x304   : > { %1202 = vmatpush.msra.mxu3 %v989_v5  ;;  %1183 = vmatpush.msrb.mxu2 %v982_v6 }
 0x306   : > { %1203 = vmatpush.msra.mxu3 %v983_v7 }
 0x331   : > { %v937_v29 = vpop.permute.xlu2 %936 }
 0x339   : > { %v929_v18 = vpop.permute.xlu1 %928 }
 0x33a   : > { %v939_v26 = vsel %vm557_vm1, %v642_v21, %v929_v18  ;;  %vm1219_vm1 = vcmask 1040384  }
 0x34f   : > { %v933_v27 = vpop.permute.xlu0 %932 }
 0x350   : > { %v941_v30 = vsel %vm940_vm3, %v939_v26, %v933_v27 }
 0x351   : > { %v943_v33 = vsel %vm942_vm4, %v941_v30, %v937_v29 }
 0x352   : > { %1376 = vmatmul.msk.f32.vlgmr.msrb.gmra.mxu1 %vm953_vm5, %v943_v33  ;;  %v1230_v33 = vlaneseq }
 0x354   : > { %vm1232_vm10 = vcmp.lt.s32.totalorder %v1230_v33, 768 }
 0x3cf   : > { %v974_v10 = vpop.f32.mrf.mxu1 }
 0x3d0   : > { %v975_v11 = vadd.f32 %v974_v10, %v952_v8 }
 0x3d2   : > { %v977_v12 = vmax.f32 %v975_v11, 0.0 }
 0x3d4   : > { %1104 = vmatmul.f32.vlgmr.msra.gmra.mxu2 %v977_v12  ;;  %1124 = vmatmul.f32.vlgmr.msrb.gmra.mxu3 %v977_v12 }
 0x3d5   : > { %1144 = vmatmul.f32.vlgmr.msra.gmra.mxu0 %v977_v12  ;;  %1164 = vmatmul.f32.vlgmr.msra.gmra.mxu1 %v977_v12 }
 0x3dc   : > { %1184 = vmatmul.f32.vlgmr.msrb.gmra.mxu2 %v977_v12  ;;  %1204 = vmatmul.f32.vlgmr.msra.gmra.mxu3 %v977_v12 }
 0x452   : > { %v1165_v20 = vpop.f32.mrf.mxu1  ;;  %v1145_v21 = vpop.f32.mrf.mxu0 }
 0x453   : > { %v1166_v25 = vadd.f32 %v1165_v20, %v1079_v17  ;;  %v1146_v27 = vadd.f32 %v1145_v21, %v1078_v19 }
 0x455   : > { %v1216_v34 = vrot.slane %v1166_v25, 5  ;;  %v1215_v37 = vrot.slane %v1146_v27, 6 }
 0x457   : > { %v1105_v15 = vpop.f32.mrf.mxu2  ;;  %v1125_v16 = vpop.f32.mrf.mxu3 }
 0x458   : > { %v1126_v18 = vadd.f32 %v1125_v16, %v1077_v14  ;;  %v1106_v30 = vadd.f32 %v1105_v15, %v1076_v22 }
 0x45a   : > { %v1214_v26 = vrot.slane %v1126_v18, 7 }
 0x45c   : > { %v1220_v35 = vsel %vm1219_vm1, %v1106_v30, %v1214_v26 }
 0x45d   : > { %v1222_v39 = vsel %vm1221_vm6, %v1220_v35, %v1215_v37 }
 0x45f   : > { %v1185_v28 = vpop.f32.mrf.mxu2  ;;  %v1205_v29 = vpop.f32.mrf.mxu3 }
 0x460   : > { %v1186_v31 = vadd.f32 %v1185_v28, %v1080_v23  ;;  %v1206_v32 = vadd.f32 %v1205_v29, %v1081_v24 }
 0x462   : > { %v1217_v36 = vrot.slane %v1186_v31, 4  ;;  %v1218_v9 = vrot.slane %v1206_v32, 3 }
 0x464   : > { %v1224_v38 = vsel %vm1223_vm7, %v1216_v34, %v1217_v36 }
 0x465   : > { %v1226_v40 = vsel %vm1225_vm8, %v1224_v38, %v1218_v9 }
 0x466   : > { %v1228_v41 = vsel %vm1227_vm9, %v1222_v39, %v1226_v40 }
 0x467   : > { %1234 = vst.msk [vmem:[%s453_s25] sm:$0x3f] %vm1232_vm10, %v1228_v41 }
 0x468   : > { %1574 = shalt.err (!%p1571_p8)
}
 0x469   : > { %1391 = dma.vmem_to_hbm [thread:$0]  (%p1734_p5), %s1249_s16, 96, %s1251_s17, %s1236_s23  }
 0x46a PF: > { %p1408_p9 = scmp.ge.s32.totalorder %s1617_s24, 2  ;;  %s1262_s18 = sand.u32 1, %s1605_s21  }
 0x46b   : > { %s1263_s28 = scalar_lea.sflag [#allocation4], %s1262_s18 }
 0x46c   : > { %p1401_p10 = pnand %p1408_p9, %p1738_p6 }
 0x46e   : > { %p1402_p11 = pneg %p1401_p10 }
 0x470   : > { %1600 = dma.done.wait (%p1402_p11), %s1263_s28, 96  }
 0x471   : > { %1602 = vsyncadd (%p1402_p11), %s1263_s28, 4294967200  ;;  %s1910_s24 = sld [smem:[#allocation12_spill]]  ;;  %s1913_s21 = smov %s1609_s22 }
 0x472   : > { %s1911_s29 = sld [smem:[#allocation11_spill]] }
 0x473   : > { %s1912_s23 = sld [smem:[#allocation13_spill]] }
 0x477   : > { %p24_p12 = scmp.ge.s32.totalorder %s1910_s24, 4  }
 0x478   : > { %s1914_s22 = smov %s1911_s29 }
 0x479   :  { %26 = sbr.rel (!%p24_p12) target bundleno = 7 (0x7), region = 115 }
 0x47e   :  { %1269 = vsyncpa [#allocation3], 1 }
 0x47f   :  { %1271 = vsyncpa [#allocation3 + $0x1], 1 }
 0x480   :  { %1272 = vsyncpa [#allocation6], 1 }
 0x481   :  { %1273 = vsyncpa [#allocation4], 1 }
 0x482   :  { %1275 = vsyncpa [#allocation4 + $0x1], 1 }

</bundles_post_ra>
